<compile_context>
chip_gen: v7x
topology: tpu7x:2x2x1
jax: 0.10.0
libtpu: 0.0.40
codegen_flags: <defaults>
</compile_context>

<pallas_src>
import math
import functools

import jax
import jax.numpy as jnp
from jax import lax
from jax.experimental import pallas as pl
from jax.experimental.pallas import tpu as pltpu

# ----------------------- config (small, consistent with the module) -----------------------
BATCH = 2
SEQ = 8
HIDDEN = 32
NUM_HEADS = 4
NUM_KV_HEADS = 2
HEAD_DIM = HIDDEN // NUM_HEADS            # 8
N_REP = NUM_HEADS // NUM_KV_HEADS         # num_key_value_groups = 2
ROPE_THETA = 10000.0
USE_ATTENTION_BIAS = False                # config.use_attention_bias

Q_DIM = NUM_HEADS * HEAD_DIM              # 32
K_DIM = NUM_KV_HEADS * HEAD_DIM           # 16
V_DIM = NUM_KV_HEADS * HEAD_DIM           # 16
QKV_DIM = Q_DIM + K_DIM + V_DIM           # 64


# ----------------------------------- Pallas kernel -----------------------------------
def _attn_kernel(bb, x_ref, cs_ref, sn_ref, wqkv_ref, wrot_ref, wo_ref, o_ref):
    """Processes `bb` batch elements per grid step.

    x_ref:    (bb*S, H)       flattened batch-major tokens
    cs_ref:   (bb*S, QKV_DIM) [cos tiled over q,k heads | ones over v cols]
    sn_ref:   (bb*S, QKV_DIM) [sin tiled over q,k heads | zeros over v cols]
    wqkv_ref: (H, QKV_DIM)    [Wq | Wk | Wv]
    wrot_ref: (H, QKV_DIM)    [Wq@R | Wk@R | 0]  (R = per-head rotate_half matrix)
    wo_ref:   (Q_DIM, H)
    o_ref:    (bb*S, H)
    """
    x = x_ref[...]                                                         # (bb*S, H)

    # One fused projection matmul + one fused "rotate_half basis" matmul (MXU).
    qkv = jnp.dot(x, wqkv_ref[...], preferred_element_type=jnp.float32)   # (bb*S, 64)
    rot = jnp.dot(x, wrot_ref[...], preferred_element_type=jnp.float32)   # (bb*S, 64)

    # RoPE on packed q|k in one full-width pass; v columns pass through (cos=1, sin=0).
    qkv = qkv * cs_ref[...] + rot * sn_ref[...]

    scale = 1.0 / math.sqrt(HEAD_DIM)

    # causal mask (is_causal=True)
    row = lax.broadcasted_iota(jnp.int32, (SEQ, SEQ), 0)
    col = lax.broadcasted_iota(jnp.int32, (SEQ, SEQ), 1)
    causal = col <= row

    # Static loops: bb (<=2) batch elements x NUM_KV_HEADS groups x N_REP q heads.
    # TODO(synk): sublane-stacking the N_REP query heads into one (N_REP*S, HD)
    # matmul would halve the tiny MXU pushes, but needs an (S,16)<->(16,S) lane/
    # sublane relayout; skipped to keep lowering robust at this problem size.
    blocks = []
    for b in range(bb):
        r0 = b * SEQ
        heads = []
        for g in range(NUM_KV_HEADS):
            kh = qkv[r0:r0 + SEQ, Q_DIM + g * HEAD_DIM:Q_DIM + (g + 1) * HEAD_DIM]
            vh = qkv[r0:r0 + SEQ,
                     Q_DIM + K_DIM + g * HEAD_DIM:Q_DIM + K_DIM + (g + 1) * HEAD_DIM]
            for j in range(N_REP):
                h = g * N_REP + j
                qh = qkv[r0:r0 + SEQ, h * HEAD_DIM:(h + 1) * HEAD_DIM]

                # scores = q k^T / sqrt(d)  (contract on head_dim, no transpose)
                s = lax.dot_general(qh, kh, (((1,), (1,)), ((), ())),
                                    preferred_element_type=jnp.float32) * scale
                s = jnp.where(causal, s, -jnp.inf)

                # softmax in float32 (matches torch softmax(dim=-1, dtype=float32))
                m = jnp.max(s, axis=-1, keepdims=True)
                e = jnp.exp(s - m)
                d = jnp.sum(e, axis=-1, keepdims=True)
                r = pl.reciprocal(d, approx=True)      # EUP slot
                r = r * (2.0 - d * r)                  # one Newton step -> ~exact
                p = e * r

                heads.append(jnp.dot(p, vh, preferred_element_type=jnp.float32))
        # per-token head concat == attn_output.transpose(1,2).reshape(bsz, q_len, -1)
        blocks.append(jnp.concatenate(heads, axis=-1))                    # (S, Q_DIM)

    attn = blocks[0] if bb == 1 else jnp.concatenate(blocks, axis=0)      # (bb*S, Q_DIM)

    # o_proj
    o_ref[...] = jnp.dot(attn, wo_ref[...],
                         preferred_element_type=jnp.float32).astype(o_ref.dtype)


def _batch_per_step(batch):
    """Fold the batch on single-TensorCore chips; keep grid parallelism otherwise."""
    try:
        kind = jax.devices()[0].device_kind.lower()
    except Exception:
        return 1
    single_tc = any(t in kind for t in
                    ("v5e", "v5 lite", "v5lite", "v6e", "v6 lite", "v6lite"))
    return batch if single_tc else 1


def mingru_attention_forward(hidden_states, position_ids, params):
    """hidden_states: (B, S, H) float32; position_ids: (B, S) int32."""
    B, S, H = hidden_states.shape
    assert S == SEQ and H == HIDDEN

    # --- Rotary embedding tables (MinGRURotaryEmbedding, rope_type='default',
    # attention_scaling = 1.0).
    # TODO(synk): dynamic-rope ('dynamic' rope_type) frequency update not modeled.
    inv_freq = 1.0 / (ROPE_THETA ** (jnp.arange(0, HEAD_DIM, 2, dtype=jnp.float32) / HEAD_DIM))
    freqs = position_ids.astype(jnp.float32)[:, :, None] * inv_freq[None, None, :]   # (B,S,HD/2)
    emb = jnp.concatenate([freqs, freqs], axis=-1)                                   # (B,S,HD)
    cos = jnp.cos(emb).reshape(B * S, HEAD_DIM)
    sin = jnp.sin(emb).reshape(B * S, HEAD_DIM)
    # Packed tables: [cos over q heads | cos over k heads | ones over v], etc.
    cs = jnp.concatenate([jnp.tile(cos, (1, NUM_HEADS + NUM_KV_HEADS)),
                          jnp.ones((B * S, V_DIM), jnp.float32)], axis=1)            # (B*S, 64)
    sn = jnp.concatenate([jnp.tile(sin, (1, NUM_HEADS + NUM_KV_HEADS)),
                          jnp.zeros((B * S, V_DIM), jnp.float32)], axis=1)           # (B*S, 64)

    wq, wk, wv, wo = params["wq"], params["wk"], params["wv"], params["wo"]

    # Fused QKV weight and fused rotate_half-basis weight (exact signed permutation
    # folded into the projection: x @ (W @ R) == rotate_half(x @ W) bitwise).
    half = HEAD_DIM // 2
    R = jnp.zeros((HEAD_DIM, HEAD_DIM), jnp.float32)
    R = R.at[:half, half:].set(jnp.eye(half, dtype=jnp.float32))
    R = R.at[half:, :half].set(-jnp.eye(half, dtype=jnp.float32))

    def head_rot(W, nheads):
        Wr = W.reshape(H, nheads, HEAD_DIM)
        Wr = jnp.einsum("ind,de->ine", Wr, R)
        return Wr.reshape(H, nheads * HEAD_DIM)

    wqkv = jnp.concatenate([wq, wk, wv], axis=1)                                      # (32, 64)
    wrot = jnp.concatenate([head_rot(wq, NUM_HEADS), head_rot(wk, NUM_KV_HEADS),
                            jnp.zeros_like(wv)], axis=1)                              # (32, 64)

    BB = _batch_per_step(B)            # B on single-TC chips, 1 on multi-TC chips
    grid = (B // BB,)

    x2 = hidden_states.reshape(B * S, H)          # free XLA reshape (batch-major rows)

    full = lambda shape: pl.BlockSpec(shape, lambda b: (0, 0))

    out = pl.pallas_call(
        functools.partial(_attn_kernel, BB),
        out_shape=jax.ShapeDtypeStruct((B * S, H), jnp.float32),
        grid_spec=pltpu.PrefetchScalarGridSpec(
            num_scalar_prefetch=0,
            grid=grid,
            in_specs=[
                pl.BlockSpec((BB * S, H), lambda b: (b, 0)),          # x
                pl.BlockSpec((BB * S, QKV_DIM), lambda b: (b, 0)),    # cos table
                pl.BlockSpec((BB * S, QKV_DIM), lambda b: (b, 0)),    # sin table
                full(wqkv.shape), full(wrot.shape), full(wo.shape),   # weights (VMEM-resident)
            ],
            out_specs=pl.BlockSpec((BB * S, H), lambda b: (b, 0)),
        ),
        compiler_params=pltpu.CompilerParams(dimension_semantics=("parallel",)),
    )(x2, cs, sn, wqkv, wrot, wo)

    return out.reshape(B, S, H)


# ----------------------------- pure-JAX reference (for checking) -----------------------------
def reference_forward(x, position_ids, params):
    B, S, H = x.shape
    q = x @ params["wq"]
    k = x @ params["wk"]
    v = x @ params["wv"]
    q = q.reshape(B, S, NUM_HEADS, HEAD_DIM).transpose(0, 2, 1, 3)
    k = k.reshape(B, S, NUM_KV_HEADS, HEAD_DIM).transpose(0, 2, 1, 3)
    v = v.reshape(B, S, NUM_KV_HEADS, HEAD_DIM).transpose(0, 2, 1, 3)

    inv_freq = 1.0 / (ROPE_THETA ** (jnp.arange(0, HEAD_DIM, 2, dtype=jnp.float32) / HEAD_DIM))
    freqs = position_ids.astype(jnp.float32)[:, :, None] * inv_freq[None, None, :]
    emb = jnp.concatenate([freqs, freqs], axis=-1)
    cos = jnp.cos(emb)[:, None, :, :]
    sin = jnp.sin(emb)[:, None, :, :]

    def rot_half(t):
        t1, t2 = t[..., : HEAD_DIM // 2], t[..., HEAD_DIM // 2:]
        return jnp.concatenate([-t2, t1], axis=-1)

    q = q * cos + rot_half(q) * sin
    k = k * cos + rot_half(k) * sin

    k = jnp.repeat(k, N_REP, axis=1)
    v = jnp.repeat(v, N_REP, axis=1)

    scores = jnp.einsum("bhqd,bhkd->bhqk", q, k) / math.sqrt(HEAD_DIM)
    causal = jnp.tril(jnp.ones((S, S), dtype=bool))
    scores = jnp.where(causal[None, None], scores, -jnp.inf)
    p = jax.nn.softmax(scores, axis=-1)
    o = jnp.einsum("bhqk,bhkd->bhqd", p, v)
    o = o.transpose(0, 2, 1, 3).reshape(B, S, NUM_HEADS * HEAD_DIM)
    return o @ params["wo"]


# --------------------------------------- main ---------------------------------------
if __name__ == "__main__":
    key = jax.random.PRNGKey(0)
    kx, kq, kk, kv, ko = jax.random.split(key, 5)

    x = jax.random.normal(kx, (BATCH, SEQ, HIDDEN), dtype=jnp.float32)
    position_ids = jnp.broadcast_to(jnp.arange(SEQ, dtype=jnp.int32)[None, :], (BATCH, SEQ))

    # deterministic parameter init (stored as (in_features, out_features), bias=False)
    params = {
        "wq": 0.05 * jax.random.normal(kq, (HIDDEN, NUM_HEADS * HEAD_DIM), dtype=jnp.float32),
        "wk": 0.05 * jax.random.normal(kk, (HIDDEN, NUM_KV_HEADS * HEAD_DIM), dtype=jnp.float32),
        "wv": 0.05 * jax.random.normal(kv, (HIDDEN, NUM_KV_HEADS * HEAD_DIM), dtype=jnp.float32),
        "wo": 0.05 * jax.random.normal(ko, (NUM_HEADS * HEAD_DIM, HIDDEN), dtype=jnp.float32),
    }

    out = mingru_attention_forward(x, position_ids, params)
    out = jax.block_until_ready(out)

    ref = jax.block_until_ready(reference_forward(x, position_ids, params))
    assert out.shape == (BATCH, SEQ, HIDDEN)
    assert jnp.allclose(out, ref, atol=1e-4, rtol=1e-4), "mismatch vs JAX reference"

    print("KERNEL_OK")
</pallas_src>

<mosaic_0001>
module attributes {stable_mosaic.version = 11 : i64} {
  func.func @_attn_kernel(%arg0: i32, %arg1: memref<8x32xf32, #tpu.memory_space<vmem>>, %arg2: memref<8x64xf32, #tpu.memory_space<vmem>>, %arg3: memref<8x64xf32, #tpu.memory_space<vmem>>, %arg4: memref<32x64xf32, #tpu.memory_space<vmem>>, %arg5: memref<32x64xf32, #tpu.memory_space<vmem>>, %arg6: memref<32x32xf32, #tpu.memory_space<vmem>>, %arg7: memref<8x32xf32, #tpu.memory_space<vmem>>) attributes {dimension_semantics = [#tpu.dimension_semantics<parallel>], iteration_bounds = array<i64: 2>, scalar_prefetch = 0 : i64, scratch_operands = 0 : i64, tpu.core_type = #tpu.core_type<tc>, window_params = [{transform_indices = @transform_0, window_bounds = array<i64: 8, 32>}, {transform_indices = @transform_1, window_bounds = array<i64: 8, 64>}, {transform_indices = @transform_2, window_bounds = array<i64: 8, 64>}, {pipeline_mode = #tpu.pipeline_mode<synchronous>, transform_indices = @transform_3, window_bounds = array<i64: 32, 64>}, {pipeline_mode = #tpu.pipeline_mode<synchronous>, transform_indices = @transform_4, window_bounds = array<i64: 32, 64>}, {pipeline_mode = #tpu.pipeline_mode<synchronous>, transform_indices = @transform_5, window_bounds = array<i64: 32, 32>}, {transform_indices = @transform_6, window_bounds = array<i64: 8, 32>}]} {
    %c0 = arith.constant 0 : index
    %c0_0 = arith.constant 0 : index
    %0 = vector.load %arg1[%c0, %c0_0] : memref<8x32xf32, #tpu.memory_space<vmem>>, vector<8x32xf32>
    %c0_1 = arith.constant 0 : index
    %c0_2 = arith.constant 0 : index
    %1 = vector.load %arg4[%c0_1, %c0_2] : memref<32x64xf32, #tpu.memory_space<vmem>>, vector<32x64xf32>
    %cst = arith.constant dense<0.000000e+00> : vector<8x64xf32>
    %2 = tpu.matmul %0, %1, %cst {dimension_numbers = #tpu.dot_dimension_numbers<[1], [0], [0], [1], [0, 0, 1, 1], [], []>} : vector<8x32xf32>, vector<32x64xf32>, vector<8x64xf32> -> vector<8x64xf32>
    %c0_3 = arith.constant 0 : index
    %c0_4 = arith.constant 0 : index
    %3 = vector.load %arg5[%c0_3, %c0_4] : memref<32x64xf32, #tpu.memory_space<vmem>>, vector<32x64xf32>
    %cst_5 = arith.constant dense<0.000000e+00> : vector<8x64xf32>
    %4 = tpu.matmul %0, %3, %cst_5 {dimension_numbers = #tpu.dot_dimension_numbers<[1], [0], [0], [1], [0, 0, 1, 1], [], []>} : vector<8x32xf32>, vector<32x64xf32>, vector<8x64xf32> -> vector<8x64xf32>
    %c0_6 = arith.constant 0 : index
    %c0_7 = arith.constant 0 : index
    %5 = vector.load %arg2[%c0_6, %c0_7] : memref<8x64xf32, #tpu.memory_space<vmem>>, vector<8x64xf32>
    %6 = arith.mulf %2, %5 : vector<8x64xf32>
    %c0_8 = arith.constant 0 : index
    %c0_9 = arith.constant 0 : index
    %7 = vector.load %arg3[%c0_8, %c0_9] : memref<8x64xf32, #tpu.memory_space<vmem>>, vector<8x64xf32>
    %8 = arith.mulf %4, %7 : vector<8x64xf32>
    %9 = arith.addf %6, %8 : vector<8x64xf32>
    %10 = tpu.iota {dimensions = array<i32: 0>} : vector<8x8xi32>
    %11 = tpu.iota {dimensions = array<i32: 1>} : vector<8x8xi32>
    %12 = arith.cmpi sle, %11, %10 : vector<8x8xi32>
    %13 = vector.extract_strided_slice %9 {offsets = [0, 32], sizes = [8, 8], strides = [1, 1]} : vector<8x64xf32> to vector<8x8xf32>
    %14 = vector.extract_strided_slice %9 {offsets = [0, 48], sizes = [8, 8], strides = [1, 1]} : vector<8x64xf32> to vector<8x8xf32>
    %15 = vector.extract_strided_slice %9 {offsets = [0, 0], sizes = [8, 8], strides = [1, 1]} : vector<8x64xf32> to vector<8x8xf32>
    %cst_10 = arith.constant dense<0.000000e+00> : vector<8x8xf32>
    %16 = tpu.matmul %15, %13, %cst_10 {dimension_numbers = #tpu.dot_dimension_numbers<[1], [1], [0], [0], [0, 0, 1, 0], [], []>} : vector<8x8xf32>, vector<8x8xf32>, vector<8x8xf32> -> vector<8x8xf32>
    %cst_11 = arith.constant 0.353553385 : f32
    %17 = vector.broadcast %cst_11 : f32 to vector<8x8xf32>
    %18 = arith.mulf %16, %17 : vector<8x8xf32>
    %cst_12 = arith.constant 0xFF800000 : f32
    %19 = vector.broadcast %cst_12 : f32 to vector<8x8xf32>
    %20 = arith.select %12, %18, %19 : vector<8x8xi1>, vector<8x8xf32>
    %cst_13 = arith.constant dense<0xFF800000> : vector<8xf32>
    %21 = vector.multi_reduction <maximumf>, %20, %cst_13 [1] : vector<8x8xf32> to vector<8xf32>
    %22 = vector.shape_cast %21 : vector<8xf32> to vector<8x1xf32>
    %23 = vector.broadcast %22 : vector<8x1xf32> to vector<8x8xf32>
    %24 = arith.subf %20, %23 : vector<8x8xf32>
    %25 = math.exp %24 : vector<8x8xf32>
    %cst_14 = arith.constant dense<0.000000e+00> : vector<8xf32>
    %26 = vector.multi_reduction <add>, %25, %cst_14 [1] : vector<8x8xf32> to vector<8xf32>
    %27 = vector.shape_cast %26 : vector<8xf32> to vector<8x1xf32>
    %28 = tpu.reciprocal %27 {approx = true} : vector<8x1xf32> -> vector<8x1xf32>
    %29 = arith.mulf %27, %28 : vector<8x1xf32>
    %cst_15 = arith.constant 2.000000e+00 : f32
    %30 = vector.broadcast %cst_15 : f32 to vector<8x1xf32>
    %31 = arith.subf %30, %29 : vector<8x1xf32>
    %32 = arith.mulf %28, %31 : vector<8x1xf32>
    %33 = vector.broadcast %32 : vector<8x1xf32> to vector<8x8xf32>
    %34 = arith.mulf %25, %33 : vector<8x8xf32>
    %cst_16 = arith.constant dense<0.000000e+00> : vector<8x8xf32>
    %35 = tpu.matmul %34, %14, %cst_16 {dimension_numbers = #tpu.dot_dimension_numbers<[1], [0], [0], [1], [0, 0, 1, 1], [], []>} : vector<8x8xf32>, vector<8x8xf32>, vector<8x8xf32> -> vector<8x8xf32>
    %36 = vector.extract_strided_slice %9 {offsets = [0, 8], sizes = [8, 8], strides = [1, 1]} : vector<8x64xf32> to vector<8x8xf32>
    %cst_17 = arith.constant dense<0.000000e+00> : vector<8x8xf32>
    %37 = tpu.matmul %36, %13, %cst_17 {dimension_numbers = #tpu.dot_dimension_numbers<[1], [1], [0], [0], [0, 0, 1, 0], [], []>} : vector<8x8xf32>, vector<8x8xf32>, vector<8x8xf32> -> vector<8x8xf32>
    %cst_18 = arith.constant 0.353553385 : f32
    %38 = vector.broadcast %cst_18 : f32 to vector<8x8xf32>
    %39 = arith.mulf %37, %38 : vector<8x8xf32>
    %cst_19 = arith.constant 0xFF800000 : f32
    %40 = vector.broadcast %cst_19 : f32 to vector<8x8xf32>
    %41 = arith.select %12, %39, %40 : vector<8x8xi1>, vector<8x8xf32>
    %cst_20 = arith.constant dense<0xFF800000> : vector<8xf32>
    %42 = vector.multi_reduction <maximumf>, %41, %cst_20 [1] : vector<8x8xf32> to vector<8xf32>
    %43 = vector.shape_cast %42 : vector<8xf32> to vector<8x1xf32>
    %44 = vector.broadcast %43 : vector<8x1xf32> to vector<8x8xf32>
    %45 = arith.subf %41, %44 : vector<8x8xf32>
    %46 = math.exp %45 : vector<8x8xf32>
    %cst_21 = arith.constant dense<0.000000e+00> : vector<8xf32>
    %47 = vector.multi_reduction <add>, %46, %cst_21 [1] : vector<8x8xf32> to vector<8xf32>
    %48 = vector.shape_cast %47 : vector<8xf32> to vector<8x1xf32>
    %49 = tpu.reciprocal %48 {approx = true} : vector<8x1xf32> -> vector<8x1xf32>
    %50 = arith.mulf %48, %49 : vector<8x1xf32>
    %cst_22 = arith.constant 2.000000e+00 : f32
    %51 = vector.broadcast %cst_22 : f32 to vector<8x1xf32>
    %52 = arith.subf %51, %50 : vector<8x1xf32>
    %53 = arith.mulf %49, %52 : vector<8x1xf32>
    %54 = vector.broadcast %53 : vector<8x1xf32> to vector<8x8xf32>
    %55 = arith.mulf %46, %54 : vector<8x8xf32>
    %cst_23 = arith.constant dense<0.000000e+00> : vector<8x8xf32>
    %56 = tpu.matmul %55, %14, %cst_23 {dimension_numbers = #tpu.dot_dimension_numbers<[1], [0], [0], [1], [0, 0, 1, 1], [], []>} : vector<8x8xf32>, vector<8x8xf32>, vector<8x8xf32> -> vector<8x8xf32>
    %57 = vector.extract_strided_slice %9 {offsets = [0, 40], sizes = [8, 8], strides = [1, 1]} : vector<8x64xf32> to vector<8x8xf32>
    %58 = vector.extract_strided_slice %9 {offsets = [0, 56], sizes = [8, 8], strides = [1, 1]} : vector<8x64xf32> to vector<8x8xf32>
    %59 = vector.extract_strided_slice %9 {offsets = [0, 16], sizes = [8, 8], strides = [1, 1]} : vector<8x64xf32> to vector<8x8xf32>
    %cst_24 = arith.constant dense<0.000000e+00> : vector<8x8xf32>
    %60 = tpu.matmul %59, %57, %cst_24 {dimension_numbers = #tpu.dot_dimension_numbers<[1], [1], [0], [0], [0, 0, 1, 0], [], []>} : vector<8x8xf32>, vector<8x8xf32>, vector<8x8xf32> -> vector<8x8xf32>
    %cst_25 = arith.constant 0.353553385 : f32
    %61 = vector.broadcast %cst_25 : f32 to vector<8x8xf32>
    %62 = arith.mulf %60, %61 : vector<8x8xf32>
    %cst_26 = arith.constant 0xFF800000 : f32
    %63 = vector.broadcast %cst_26 : f32 to vector<8x8xf32>
    %64 = arith.select %12, %62, %63 : vector<8x8xi1>, vector<8x8xf32>
    %cst_27 = arith.constant dense<0xFF800000> : vector<8xf32>
    %65 = vector.multi_reduction <maximumf>, %64, %cst_27 [1] : vector<8x8xf32> to vector<8xf32>
    %66 = vector.shape_cast %65 : vector<8xf32> to vector<8x1xf32>
    %67 = vector.broadcast %66 : vector<8x1xf32> to vector<8x8xf32>
    %68 = arith.subf %64, %67 : vector<8x8xf32>
    %69 = math.exp %68 : vector<8x8xf32>
    %cst_28 = arith.constant dense<0.000000e+00> : vector<8xf32>
    %70 = vector.multi_reduction <add>, %69, %cst_28 [1] : vector<8x8xf32> to vector<8xf32>
    %71 = vector.shape_cast %70 : vector<8xf32> to vector<8x1xf32>
    %72 = tpu.reciprocal %71 {approx = true} : vector<8x1xf32> -> vector<8x1xf32>
    %73 = arith.mulf %71, %72 : vector<8x1xf32>
    %cst_29 = arith.constant 2.000000e+00 : f32
    %74 = vector.broadcast %cst_29 : f32 to vector<8x1xf32>
    %75 = arith.subf %74, %73 : vector<8x1xf32>
    %76 = arith.mulf %72, %75 : vector<8x1xf32>
    %77 = vector.broadcast %76 : vector<8x1xf32> to vector<8x8xf32>
    %78 = arith.mulf %69, %77 : vector<8x8xf32>
    %cst_30 = arith.constant dense<0.000000e+00> : vector<8x8xf32>
    %79 = tpu.matmul %78, %58, %cst_30 {dimension_numbers = #tpu.dot_dimension_numbers<[1], [0], [0], [1], [0, 0, 1, 1], [], []>} : vector<8x8xf32>, vector<8x8xf32>, vector<8x8xf32> -> vector<8x8xf32>
    %80 = vector.extract_strided_slice %9 {offsets = [0, 24], sizes = [8, 8], strides = [1, 1]} : vector<8x64xf32> to vector<8x8xf32>
    %cst_31 = arith.constant dense<0.000000e+00> : vector<8x8xf32>
    %81 = tpu.matmul %80, %57, %cst_31 {dimension_numbers = #tpu.dot_dimension_numbers<[1], [1], [0], [0], [0, 0, 1, 0], [], []>} : vector<8x8xf32>, vector<8x8xf32>, vector<8x8xf32> -> vector<8x8xf32>
    %cst_32 = arith.constant 0.353553385 : f32
    %82 = vector.broadcast %cst_32 : f32 to vector<8x8xf32>
    %83 = arith.mulf %81, %82 : vector<8x8xf32>
    %cst_33 = arith.constant 0xFF800000 : f32
    %84 = vector.broadcast %cst_33 : f32 to vector<8x8xf32>
    %85 = arith.select %12, %83, %84 : vector<8x8xi1>, vector<8x8xf32>
    %cst_34 = arith.constant dense<0xFF800000> : vector<8xf32>
    %86 = vector.multi_reduction <maximumf>, %85, %cst_34 [1] : vector<8x8xf32> to vector<8xf32>
    %87 = vector.shape_cast %86 : vector<8xf32> to vector<8x1xf32>
    %88 = vector.broadcast %87 : vector<8x1xf32> to vector<8x8xf32>
    %89 = arith.subf %85, %88 : vector<8x8xf32>
    %90 = math.exp %89 : vector<8x8xf32>
    %cst_35 = arith.constant dense<0.000000e+00> : vector<8xf32>
    %91 = vector.multi_reduction <add>, %90, %cst_35 [1] : vector<8x8xf32> to vector<8xf32>
    %92 = vector.shape_cast %91 : vector<8xf32> to vector<8x1xf32>
    %93 = tpu.reciprocal %92 {approx = true} : vector<8x1xf32> -> vector<8x1xf32>
    %94 = arith.mulf %92, %93 : vector<8x1xf32>
    %cst_36 = arith.constant 2.000000e+00 : f32
    %95 = vector.broadcast %cst_36 : f32 to vector<8x1xf32>
    %96 = arith.subf %95, %94 : vector<8x1xf32>
    %97 = arith.mulf %93, %96 : vector<8x1xf32>
    %98 = vector.broadcast %97 : vector<8x1xf32> to vector<8x8xf32>
    %99 = arith.mulf %90, %98 : vector<8x8xf32>
    %cst_37 = arith.constant dense<0.000000e+00> : vector<8x8xf32>
    %100 = tpu.matmul %99, %58, %cst_37 {dimension_numbers = #tpu.dot_dimension_numbers<[1], [0], [0], [1], [0, 0, 1, 1], [], []>} : vector<8x8xf32>, vector<8x8xf32>, vector<8x8xf32> -> vector<8x8xf32>
    %101 = tpu.concatenate %35, %56, %79, %100 in 1 : vector<8x8xf32>, vector<8x8xf32>, vector<8x8xf32>, vector<8x8xf32> -> vector<8x32xf32>
    %c0_38 = arith.constant 0 : index
    %c0_39 = arith.constant 0 : index
    %102 = vector.load %arg6[%c0_38, %c0_39] : memref<32x32xf32, #tpu.memory_space<vmem>>, vector<32x32xf32>
    %cst_40 = arith.constant dense<0.000000e+00> : vector<8x32xf32>
    %103 = tpu.matmul %101, %102, %cst_40 {dimension_numbers = #tpu.dot_dimension_numbers<[1], [0], [0], [1], [0, 0, 1, 1], [], []>} : vector<8x32xf32>, vector<32x32xf32>, vector<8x32xf32> -> vector<8x32xf32>
    %c0_41 = arith.constant 0 : index
    %c0_42 = arith.constant 0 : index
    %104 = vector.load %arg7[%c0_41, %c0_42] : memref<8x32xf32, #tpu.memory_space<vmem>>, vector<8x32xf32>
    tpu.vector_store %arg7[%c0_41, %c0_42], %103 {strides = array<i32>} : memref<8x32xf32, #tpu.memory_space<vmem>>, vector<8x32xf32>,
    return
  }
  func.func @transform_0(%arg0: i32) -> (i32, i32) {
    %c0_i32 = arith.constant 0 : i32
    %c0_i32_0 = arith.constant 0 : i32
    return %arg0, %c0_i32 : i32, i32
  }
  func.func @transform_1(%arg0: i32) -> (i32, i32) {
    %c0_i32 = arith.constant 0 : i32
    %c0_i32_0 = arith.constant 0 : i32
    return %arg0, %c0_i32 : i32, i32
  }
  func.func @transform_2(%arg0: i32) -> (i32, i32) {
    %c0_i32 = arith.constant 0 : i32
    %c0_i32_0 = arith.constant 0 : i32
    return %arg0, %c0_i32 : i32, i32
  }
  func.func @transform_3(%arg0: i32) -> (i32, i32) {
    %c0_i32 = arith.constant 0 : i32
    %c0_i32_0 = arith.constant 0 : i32
    %c0_i32_1 = arith.constant 0 : i32
    return %c0_i32, %c0_i32_0 : i32, i32
  }
  func.func @transform_4(%arg0: i32) -> (i32, i32) {
    %c0_i32 = arith.constant 0 : i32
    %c0_i32_0 = arith.constant 0 : i32
    %c0_i32_1 = arith.constant 0 : i32
    return %c0_i32, %c0_i32_0 : i32, i32
  }
  func.func @transform_5(%arg0: i32) -> (i32, i32) {
    %c0_i32 = arith.constant 0 : i32
    %c0_i32_0 = arith.constant 0 : i32
    %c0_i32_1 = arith.constant 0 : i32
    return %c0_i32, %c0_i32_0 : i32, i32
  }
  func.func @transform_6(%arg0: i32) -> (i32, i32) {
    %c0_i32 = arith.constant 0 : i32
    %c0_i32_0 = arith.constant 0 : i32
    return %arg0, %c0_i32 : i32, i32
  }
}

</mosaic_0001>

<bundles_post_ra>
// kernel: tpu_custom_call.1
= control target key start
LH: loop header
LB: loop body
LE: loop exit
PB: predicated region body
PF: predicated region fallthrough
CT: control target
= control target key end

     0   :  { %s2468_s0 = inlined_call_operand.hbm [shape: f32[16,32], index: 0, kind: input, shape index: {}]   ;;  %s2469_s1 = inlined_call_operand.hbm [shape: f32[16,64], index: 1, kind: input, shape index: {}]   ;;  %s2470_s2 = inlined_call_operand.hbm [shape: f32[16,64], index: 2, kind: input, shape index: {}]   ;;  %s2471_s3 = inlined_call_operand.hbm [shape: f32[32,64], index: 3, kind: input, shape index: {}]   ;;  %s2472_s4 = inlined_call_operand.hbm [shape: f32[32,64], index: 4, kind: input, shape index: {}]   ;;  %s2473_s5 = inlined_call_operand.hbm [shape: f32[32,32], index: 5, kind: input, shape index: {}]   ;;  %s2474_s6 = inlined_call_operand.hbm [shape: f32[16,32], index: 6, kind: output, shape index: {}]  }
   0x1   :  { %2497 = sst [smem:[#allocation24_spill]] %s2469_s1 }
   0x2   :  { %2498 = sst [smem:[#allocation25_spill]] %s2471_s3 }
   0x3   :  { %11 = vsyncpa [#allocation3], 0 }
   0x4   :  { %13 = vsyncpa [#allocation3 + $0x1], 0 }
   0x5   :  { %14 = vsyncpa [#allocation6], 0 }
   0x6   :  { %16 = vsyncpa [#allocation6 + $0x1], 0 }
   0x7   :  { %17 = vsyncpa [#allocation9], 0 }
   0x8   :  { %18 = vsyncpa [#allocation12], 0 }
   0x9   :  { %19 = vsyncpa [#allocation4], 0 }
   0xa   :  { %21 = vsyncpa [#allocation4 + $0x1], 0  ;;  %s2052_s21 = smov 0   ;;  %s2054_s22 = smov 0  }
   0xb   :  { %s2056_s23 = smov 0   ;;  %s2058_s24 = smov 0  }
   0xc LB: > { %2499 = sst [smem:[#allocation19_spill]] %s1981_s21  ;;  %s2073_s25 = sadd.s32 4294967295, %s1993_s24   ;;  %s1993_s24 = sphi %s2058_s24, %s2535_s24   ;;  %s1989_s23 = sphi %s2056_s23, %s2539_s23   ;;  %s1985_s22 = sphi %s2054_s22, %s2538_s22   ;;  %s1981_s21 = sphi %s2052_s21, %s2537_s21  }
   0xd   : > { %2500 = sst [smem:[#allocation20_spill]] %s1993_s24  ;;  %s1462_s26 = sadd.s32 4294967294, %s1993_s24  }
   0xe   : > { %p47_p0 = scmp.ne.s32.totalorder %s1985_s22, %s1981_s21  ;;  %p2475_p1 = scmp.eq.s32.totalorder %s2073_s25, 0 }
   0xf   : > { %p192_p3 = scmp.eq.s32.totalorder %s1462_s26, 1  ;;  %p1463_p5 = scmp.ge.s32.totalorder %s1993_s24, 1 }
  0x10   : > { %p2082_p4 = por %p2475_p1, %p47_p0  ;;  %p199_p7 = scmp.lt.s32.totalorder %s1993_s24, 3 }
  0x11   : > { %p2087_p6 = por %p192_p3, %p47_p0  ;;  %s1995_s30 = smov [#allocation8]  }
  0x12   : > { %s2501_s27 = scalar_select %p2082_p4, 1, 0 }
  0x13   : > { %s2502_s28 = scalar_select %p2087_p6, 1, 0 }
  0x14   : > { %p2092_p8 = pnand %p1463_p5, %p199_p7  ;;  %s211_s7 = sshll.u32 %s1995_s30, 4  ;;  %s2096_s7 = int_to_ptr.vmem [resolvable:$true] %s211_s7 }
  0x15   : > { %2503 = sst [smem:[#allocation21_spill]] %s2502_s28  ;;  %s2108_s9 = sadd.s32 1, %s1993_s24  }
  0x16   : > { %s2504_s29 = scalar_select %p2092_p8, 1, 0 }
  0x17   : > { %p1643_p9 = pneg %p2092_p8  ;;  %2506 = sst [smem:[#allocation22_spill]] %s2108_s9 }
  0x18   : > { %s34_s10 = sadd.s32 1, %s1989_s23  ;;  %s31_s11 = ssub.s32 %s1993_s24, %s2108_s9 }
  0x19   : > { %p2103_p11 = pnand %p1643_p9, %p2475_p1  ;;  %s2507_s3 = sld [smem:[#allocation25_spill]] }
  0x1b   : > { %s2505_s8 = scalar_select %p2103_p11, 1, 0 }
  0x1c   : > { %p2121_p13 = pneg %p2103_p11 }
  0x1e   : > { %s2508_s17 = scalar_select %p2121_p13, 1, 0 }
  0x1f   : > { %s1741_s14 = scalar_lea.hbm %s2507_s3, 512 }
  0x20   : > { %p1742_p12 = scmp.ne.s32.totalorder %s2507_s3, %s1741_s14  ;;  %p1748_p5 = scmp.lt.u32.totalorder %s1741_s14, %s2507_s3 }
  0x22   : > { %p1744_p0 = pnand %p2121_p13, %p1742_p12 }
  0x24   : > { %p1745_p3 = pneg %p1744_p0 }
  0x26   : > { %p1750_p7 = pnand %p1748_p5, %p1745_p3 }
  0x28   : > { %1753 = shalt.err (!%p1750_p7)
}
  0x29   : > { %s1754_s20 = scalar_lea.vmem %s2096_s7, 512  ;;  %p1762_p2 = scmp.lt.s32.totalorder %s2096_s7, %s2096_s7 }
  0x2a   : > { %p1755_p9 = scmp.ne.s32.totalorder %s2096_s7, %s1754_s20  ;;  %p1763_p6 = scmp.lt.s32.totalorder %s1754_s20, %s1754_s20 }
  0x2c   : > { %p1757_p10 = pnand %p1755_p9, %p2121_p13  ;;  %p1764_p12 = por %p1763_p6, %p1762_p2 }
  0x2e   : > { %p1758_p1 = pneg %p1757_p10 }
  0x30   : > { %p1765_p0 = pnand %p1764_p12, %p1758_p1 }
  0x32   : > { %1768 = shalt.err (!%p1765_p0)
}
  0x33   : > { %s2476_s26 = smov 128   ;;  %s2479_s30 = smov 8  }
  0x34   : > { %1646 = dma.hbm_to_vmem [thread:$0]  (!%p2103_p11), %s2507_s3, 512, %s2096_s7, [#allocation9], %s2476_s26, %s2476_s26, %s2479_s30  }
  0x35   : > { %p32_p1 = scmp.eq.s32.totalorder %s31_s11, 0  ;;  %p41_p2 = scmp.ne.s32.totalorder %s1989_s23, %s1985_s22 }
  0x36   : > { %p42_p6 = scmp.eq.s32.totalorder %s1993_s24, 0  ;;  %p1670_p10 = scmp.lt.s32.totalorder %s1993_s24, 2 }
  0x37   : > { %s2150_s14 = scalar_select %p32_p1, %s1989_s23, %s34_s10  }
  0x38   : > { %p43_p3 = por %p42_p6, %p41_p2  ;;  %p2510_p5 = scmp.eq.s32.totalorder %s2073_s25, 1 }
  0x39   : > { %2509 = sst [smem:[#allocation23_spill]] %s2150_s14  ;;  %s2478_s16 = sand.u32 1, %s1989_s23  }
  0x3a   : > { %p2154_p7 = por %p2510_p5, %p41_p2  ;;  %s2160_s18 = sshll.u32 %s1993_s24, 7 }
  0x3b   : > { %s2164_s19 = sshll.u32 %s2478_s16, 3  ;;  %p2166_p9 = pnand %p1670_p10, %p43_p3 }
  0x3c   : > { %s2511_s15 = scalar_select %p2154_p7, 1, 0 }
  0x3d   : > { %s2512_s7 = scalar_select %p2166_p9, 1, 0 }
  0x3e   : > { %s269_s10 = sand.u32 1, %s1993_s24   ;;  %s2513_s1 = sld [smem:[#allocation24_spill]] }
  0x3f   : > { %s273_s13 = scalar_lea.vmem [#allocation5], %s2164_s19  ;;  %s2180_s16 = scalar_lea.sflag [#allocation6], %s269_s10 }
  0x40   : > { %s280_s26 = sshll.u32 %s273_s13, 4  ;;  %p2186_p0 = pneg %p2166_p9  ;;  %s2178_s26 = int_to_ptr.vmem [resolvable:$true] %s280_s26 }
  0x42   : > { %s2514_s3 = scalar_select %p2186_p0, 1, 0 }
  0x44   : > { %s2175_s12 = scalar_lea.hbm %s2513_s1, %s2160_s18  ;;  %s1774_s14 = scalar_lea.hbm %s2513_s1, 256 }
  0x45   : > { %s1769_s30 = scalar_lea.hbm %s2175_s12, 128  ;;  %p1775_p6 = scmp.lt.u32.totalorder %s2175_s12, %s2513_s1 }
  0x46   : > { %p1770_p12 = scmp.ne.s32.totalorder %s2175_s12, %s1769_s30  ;;  %p1776_p10 = scmp.lt.u32.totalorder %s1774_s14, %s1769_s30 }
  0x47   : > { %p1778_p5 = scmp.lt.u32.totalorder %s1769_s30, %s2175_s12 }
  0x48   : > { %p1772_p1 = pnand %p2186_p0, %p1770_p12  ;;  %p1777_p3 = por %p1776_p10, %p1775_p6 }
  0x4a   : > { %p1773_p2 = pneg %p1772_p1  ;;  %p1779_p7 = por %p1778_p5, %p1777_p3 }
  0x4c   : > { %p1780_p4 = pnand %p1779_p7, %p1773_p2 }
  0x4e   : > { %1783 = shalt.err (!%p1780_p4)
}
  0x4f   : > { %s1784_s10 = scalar_lea.vmem %s2178_s26, 128  ;;  %s1998_s11 = smov [#allocation5]  }
  0x50   : > { %p1785_p12 = scmp.ne.s32.totalorder %s2178_s26, %s1784_s10  ;;  %s1789_s20 = sshll.u32 %s1998_s11, 4  ;;  %s1790_s20 = int_to_ptr.vmem [resolvable:$false] %s1789_s20 }
  0x51   : > { %s1791_s9 = scalar_lea.vmem %s1790_s20, 256  ;;  %p1792_p11 = scmp.lt.s32.totalorder %s2178_s26, %s1790_s20 }
  0x52   : > { %p1787_p1 = pnand %p1785_p12, %p2186_p0  ;;  %p1793_p13 = scmp.lt.s32.totalorder %s1791_s9, %s1784_s10 }
  0x54   : > { %p1788_p8 = pneg %p1787_p1  ;;  %p1794_p6 = por %p1793_p13, %p1792_p11 }
  0x56   : > { %p1795_p10 = pnand %p1794_p6, %p1788_p8 }
  0x58   : > { %1798 = shalt.err (!%p1795_p10)
}
  0x59   : > { %1659 = dma.hbm_to_vmem [thread:$0]  (!%p2166_p9), %s2175_s12, 128, %s2178_s26, %s2180_s16  }
  0x5a   : > { %s1999_s30 = smov [#allocation10]   ;;  %s2000_s13 = smov [#allocation11]  }
  0x5b   : > { %s224_s14 = sshll.u32 %s1999_s30, 4  ;;  %s237_s1 = sshll.u32 %s2000_s13, 4  ;;  %s225_s14 = int_to_ptr.vmem [resolvable:$true] %s224_s14  ;;  %s238_s1 = int_to_ptr.vmem [resolvable:$true] %s237_s1 }
  0x5c   : > { %s1799_s20 = scalar_lea.hbm %s2472_s4, 512  ;;  %p2515_p8 = scmp.ne.s32.totalorder %s2508_s17, 0 }
  0x5d   : > { %p1800_p4 = scmp.ne.s32.totalorder %s2472_s4, %s1799_s20  ;;  %p1806_p7 = scmp.lt.u32.totalorder %s1799_s20, %s2472_s4 }
  0x5f   : > { %p1802_p11 = pnand %p1800_p4, %p2515_p8 }
  0x61   : > { %p1803_p13 = pneg %p1802_p11 }
  0x63   : > { %p1808_p2 = pnand %p1806_p7, %p1803_p13 }
  0x65   : > { %1811 = shalt.err (!%p1808_p2)
}
  0x66   : > { %s1812_s26 = scalar_lea.vmem %s225_s14, 512  ;;  %p1820_p1 = scmp.lt.s32.totalorder %s225_s14, %s225_s14 }
  0x67   : > { %p1813_p3 = scmp.ne.s32.totalorder %s225_s14, %s1812_s26  ;;  %p1821_p6 = scmp.lt.s32.totalorder %s1812_s26, %s1812_s26 }
  0x69   : > { %p1815_p5 = pnand %p1813_p3, %p2515_p8  ;;  %p1822_p10 = por %p1821_p6, %p1820_p1 }
  0x6b   : > { %p1816_p12 = pneg %p1815_p5 }
  0x6d   : > { %p1823_p9 = pnand %p1822_p10, %p1816_p12 }
  0x6f   : > { %1826 = shalt.err (!%p1823_p9)
}
  0x70   : > { %p2516_p4 = scmp.ne.s32.totalorder %s2505_s8, 0  ;;  %s2517_s24 = smov 8  }
  0x71   : > { %s2518_s12 = smov 128   ;;  %s1827_s11 = scalar_lea.hbm %s2473_s5, 512 }
  0x72   : > { %1649 = dma.hbm_to_vmem [thread:$0]  (!%p2516_p4), %s2472_s4, 512, %s225_s14, [#allocation9], %s2518_s12, %s2518_s12, %s2517_s24  }
  0x73   : > { %p1828_p11 = scmp.ne.s32.totalorder %s2473_s5, %s1827_s11  ;;  %p1834_p7 = scmp.lt.u32.totalorder %s1827_s11, %s2473_s5 }
  0x75   : > { %p1830_p9 = pnand %p1828_p11, %p2515_p8 }
  0x77   : > { %p1831_p13 = pneg %p1830_p9 }
  0x79   : > { %p1836_p2 = pnand %p1834_p7, %p1831_p13 }
  0x7b   : > { %1839 = shalt.err (!%p1836_p2)
}
  0x7c   : > { %s1840_s21 = scalar_lea.vmem %s238_s1, 512  ;;  %p1848_p1 = scmp.lt.s32.totalorder %s238_s1, %s238_s1 }
  0x7d   : > { %p1841_p3 = scmp.ne.s32.totalorder %s238_s1, %s1840_s21  ;;  %p1849_p6 = scmp.lt.s32.totalorder %s1840_s21, %s1840_s21 }
  0x7f   : > { %p1843_p5 = pnand %p1841_p3, %p2515_p8  ;;  %p1850_p10 = por %p1849_p6, %p1848_p1 }
  0x81   : > { %p1844_p12 = pneg %p1843_p5 }
  0x83   : > { %p1851_p0 = pnand %p1850_p10, %p1844_p12 }
  0x85   : > { %1854 = shalt.err (!%p1851_p0)
}
  0x86   : > { %1652 = dma.hbm_to_vmem [thread:$0]  (!%p2516_p4), %s2473_s5, 512, %s238_s1, [#allocation12], %s2518_s12, %s2518_s12, %s2517_s24  }
  0x87   : > { %s2256_s13 = scalar_lea.hbm %s2468_s0, %s2160_s18  ;;  %s255_s8 = scalar_lea.vmem [#allocation2], %s2164_s19 }
  0x88   : > { %s262_s11 = sshll.u32 %s255_s8, 4  ;;  %s2265_s9 = scalar_lea.hbm %s2470_s2, %s2160_s18  ;;  %s2259_s11 = int_to_ptr.vmem [resolvable:$true] %s262_s11 }
  0x89   : > { %s2519_s26 = sand.u32 1, %s1989_s23   ;;  %s1855_s24 = scalar_lea.hbm %s2256_s13, 128 }
  0x8a   : > { %s252_s1 = scalar_lea.sflag [#allocation3], %s2519_s26  ;;  %p1856_p0 = scmp.ne.s32.totalorder %s2256_s13, %s1855_s24 }
  0x8b   : > { %p2520_p8 = scmp.ne.s32.totalorder %s2514_s3, 0  ;;  %s1860_s14 = scalar_lea.hbm %s2468_s0, 256 }
  0x8c   : > { %p1861_p9 = scmp.lt.u32.totalorder %s2256_s13, %s2468_s0  ;;  %p1862_p13 = scmp.lt.u32.totalorder %s1860_s14, %s1855_s24 }
  0x8d   : > { %p1858_p4 = pnand %p1856_p0, %p2520_p8  ;;  %p1864_p2 = scmp.lt.u32.totalorder %s1855_s24, %s2256_s13 }
  0x8e   : > { %p1863_p7 = por %p1862_p13, %p1861_p9 }
  0x8f   : > { %p1859_p11 = pneg %p1858_p4 }
  0x90   : > { %p1865_p3 = por %p1864_p2, %p1863_p7 }
  0x92   : > { %p1866_p5 = pnand %p1865_p3, %p1859_p11 }
  0x94   : > { %1869 = shalt.err (!%p1866_p5)
}
  0x95   : > { %s1870_s18 = scalar_lea.vmem %s2259_s11, 128  ;;  %s2001_s30 = smov [#allocation2]  }
  0x96   : > { %p1871_p12 = scmp.ne.s32.totalorder %s2259_s11, %s1870_s18  ;;  %s1875_s8 = sshll.u32 %s2001_s30, 4  ;;  %s1876_s8 = int_to_ptr.vmem [resolvable:$false] %s1875_s8 }
  0x97   : > { %s1877_s20 = scalar_lea.vmem %s1876_s8, 256  ;;  %p1878_p10 = scmp.lt.s32.totalorder %s2259_s11, %s1876_s8 }
  0x98   : > { %p1873_p1 = pnand %p1871_p12, %p2520_p8  ;;  %p1879_p0 = scmp.lt.s32.totalorder %s1877_s20, %s1870_s18 }
  0x9a   : > { %p1874_p6 = pneg %p1873_p1  ;;  %p1880_p4 = por %p1879_p0, %p1878_p10 }
  0x9c   : > { %p1881_p9 = pnand %p1880_p4, %p1874_p6 }
  0x9e   : > { %1884 = shalt.err (!%p1881_p9)
}
  0x9f   : > { %p2521_p11 = scmp.ne.s32.totalorder %s2512_s7, 0  ;;  %s291_s10 = scalar_lea.vmem [#allocation7], %s2164_s19 }
  0xa0   : > { %s298_s26 = sshll.u32 %s291_s10, 4  ;;  %s1885_s24 = scalar_lea.hbm %s2265_s9, 128  ;;  %s299_s26 = int_to_ptr.vmem [resolvable:$true] %s298_s26 }
  0xa1   : > { %1656 = dma.hbm_to_vmem [thread:$0]  (!%p2521_p11), %s2256_s13, 128, %s2259_s11, %s252_s1  }
  0xa2   : > { %p1886_p13 = scmp.ne.s32.totalorder %s2265_s9, %s1885_s24  ;;  %s1890_s14 = scalar_lea.hbm %s2470_s2, 256 }
  0xa3   : > { %p1891_p3 = scmp.lt.u32.totalorder %s2265_s9, %s2470_s2  ;;  %p1892_p5 = scmp.lt.u32.totalorder %s1890_s14, %s1885_s24 }
  0xa4   : > { %p1888_p7 = pnand %p1886_p13, %p2520_p8  ;;  %p1894_p1 = scmp.lt.u32.totalorder %s1885_s24, %s2265_s9 }
  0xa5   : > { %p1893_p12 = por %p1892_p5, %p1891_p3 }
  0xa6   : > { %p1889_p2 = pneg %p1888_p7 }
  0xa7   : > { %p1895_p6 = por %p1894_p1, %p1893_p12 }
  0xa9   : > { %p1896_p10 = pnand %p1895_p6, %p1889_p2 }
  0xab   : > { %1899 = shalt.err (!%p1896_p10)
}
  0xac   : > { %s1900_s19 = scalar_lea.vmem %s299_s26, 128  ;;  %s2002_s13 = smov [#allocation7]  }
  0xad   : > { %p1901_p0 = scmp.ne.s32.totalorder %s299_s26, %s1900_s19  ;;  %s1905_s11 = sshll.u32 %s2002_s13, 4  ;;  %s1906_s11 = int_to_ptr.vmem [resolvable:$false] %s1905_s11 }
  0xae   : > { %s1907_s1 = scalar_lea.vmem %s1906_s11, 256  ;;  %p1908_p13 = scmp.lt.s32.totalorder %s299_s26, %s1906_s11 }
  0xaf   : > { %p1903_p4 = pnand %p1901_p0, %p2520_p8  ;;  %p1909_p7 = scmp.lt.s32.totalorder %s1907_s1, %s1900_s19 }
  0xb1   : > { %p1904_p9 = pneg %p1903_p4  ;;  %p1910_p11 = por %p1909_p7, %p1908_p13 }
  0xb3   : > { %p1911_p3 = pnand %p1910_p11, %p1904_p9 }
  0xb5   : > { %1914 = shalt.err (!%p1911_p3)
}
  0xb6   : > { %p2522_p5 = scmp.ne.s32.totalorder %s2512_s7, 0  ;;  %p2523_p2 = scmp.ne.s32.totalorder %s2504_s29, 0 }
  0xb7   : > { %s2312_s3 = sand.u32 (!%p2523_p2), 1, %s1985_s22   ;;  %p2524_p8 = scmp.ne.s32.totalorder (!%p2523_p2), %s2501_s27, 0 }
  0xb8   : > { %1662 = dma.hbm_to_vmem [thread:$0]  (!%p2522_p5), %s2265_s9, 128, %s299_s26, %s2180_s16  }
  0xb9   : > { %307 = sbr.rel (%p2523_p2) target bundleno = 1648 (0x670), region = 44  ;;  %s2315_s18 = sshll.u32 (!%p2523_p2), %s2312_s3, 3 }
  0xba   : > { %s310_s30 = scalar_lea.sflag (!%p2523_p2), [#allocation3], %s2312_s3  ;;  %s313_s8 = scalar_lea.vmem (!%p2523_p2), [#allocation2], %s2315_s18 }
  0xc0   : > { %1960 = dma.done.wait (%p2524_p8), %s310_s30, 128  }
  0xc1   : > { %1962 = vsyncadd (%p2524_p8), %s310_s30, 4294967168  ;;  %s318_s29 = sand.u32 1, %s2073_s25   ;;  %s322_s7 = scalar_lea.vmem [#allocation5], %s2315_s18 }
  0xc2   : > { %s319_s16 = scalar_lea.sflag [#allocation6], %s318_s29 }
  0xc3   : > { %1964 = dma.done.wait (%p2524_p8), %s319_s16, 256  }
  0xc4   : > { %1966 = vsyncadd (%p2524_p8), %s319_s16, 4294967040  ;;  %s331_s9 = scalar_lea.vmem [#allocation7], %s2315_s18  ;;  %p2525_p11 = scmp.eq.s32.totalorder %s2073_s25, 0 }
  0xc6   : > { %1968 = dma.done.wait (%p2525_p11), [#allocation9], 1024   ;;  %p2526_p12 = pmov %p2525_p11 }
  0xc7   : > { %p2527_p1 = pmov %p2525_p11 }
  0xc8   : > { %1970 = vsyncadd (%p2526_p12), [#allocation9], 4294966272 }
  0xc9   : > { %1972 = dma.done.wait (%p2527_p1), [#allocation12], 512   ;;  %p2528_p6 = pmov %p2527_p1 }
  0xca   : > { %v2003_v0 = vmov 0.0|0.0   ;;  %vm2004_vm0 = vmmov 0   ;;  %v2005_v1 = vmov 0.0   ;;  %v383_v2 = vld [vmem:[#allocation8] sm:$0xff]  ;;  %v384_v3 = vld [vmem:[#allocation8 + $0x8] sm:$0xff]  ;;  %v385_v7 = vld [vmem:[#allocation8 + $0x10] sm:$0xff]  ;;  %v540_v29 = vlaneseq }
  0xcb   : > { %1974 = vsyncadd (%p2528_p6), [#allocation12], 4294966784  ;;  %1605 = vmatprep.subr.bf16.mxu0 %v2003_v0  ;;  %1611 = vmatprep.subr.bf16.mxu1 %v2003_v0  ;;  %v461_v4 = vld [vmem:[#allocation10] sm:$0xff]  ;;  %v1606_v5 = vpack.c.bf16 %v384_v3, %v383_v2  ;;  %v462_v6 = vld [vmem:[#allocation10 + $0x8] sm:$0xff]  ;;  %vm387_vm1 = vcmask 261120   ;;  %s2006_s27 = smov 88  }
  0xcc   : > { %1540 = vmatprep.mubr.msk.f32.mxu0 %vm2004_vm0, %v2005_v1  ;;  %1551 = vmatprep.mubr.msk.f32.mxu1 %vm2004_vm0, %v2005_v1  ;;  %v386_v8 = vld [vmem:[#allocation8 + $0x18] sm:$0xff]  ;;  %v1612_v9 = vpack.c.bf16 %v462_v6, %v461_v4  ;;  %v463_v10 = vld [vmem:[#allocation10 + $0x10] sm:$0xff]  ;;  %v535_v15 = vld [vmem:[%s322_s7] sm:$0xff]  ;;  %s2007_s20 = smov 96   ;;  %s2008_s10 = smov 112   ;;  %vm548_vm2 = vcmask 64512  }
  0xcd   : > { %v464_v11 = vld [vmem:[#allocation10 + $0x18] sm:$0xff]  ;;  %1607 = vmatpush3.bf16.msra.mxu0 %v1606_v5  ;;  %v1609_v12 = vpack.c.bf16 %v386_v8, %v385_v7  ;;  %s2009_s26 = smov 120   ;;  %s2010_s24 = smov 104   ;;  %v541_v30 = vshrl.u32 %v540_v29, 7  ;;  %v543_v31 = vand.u32 127, %v540_v29  ;;  %vm1224_vm4 = vcmask 130048  }
  0xce   : > { %1613 = vmatpush3.bf16.msra.mxu1 %v1612_v9  ;;  %1608 = vmatprep.subr.bf16.mxu0 %v2003_v0  ;;  %v1615_v13 = vpack.c.bf16 %v464_v11, %v463_v10  ;;  %v382_v14 = vld [vmem:[%s313_s8] sm:$0xff]  ;;  %s2011_s12 = smov 72   ;;  %s2012_s21 = smov 80   ;;  %vm1226_vm5 = vcmask 195584  }
  0xcf   : > { %1614 = vmatprep.subr.bf16.mxu1 %v2003_v0  ;;  %v537_v16 = vld [vmem:[%s331_s9] sm:$0xff]  ;;  %vm544_vm3 = vcmp.le.s32.totalorder %v543_v31, %v541_v30  ;;  %s2013_s14 = smov 8   ;;  %s2014_s28 = smov 16  }
  0xd0   : > { %s2015_s17 = smov 24   ;;  %s1498_s19 = sshll.u32 %s2073_s25, 7 }
  0xd1   : > { %1610 = vmatpush3.bf16.msra.mxu0 %v1609_v12  ;;  %s381_s13 = scalar_lea.vmem [#allocation13], %s2315_s18  ;;  %s2423_s8 = scalar_lea.hbm %s2474_s6, %s1498_s19 }
  0xd2   : > { %1616 = vmatpush3.bf16.msra.mxu1 %v1615_v13  ;;  %1564 = vmatprep.subr.mxu0 %v2005_v1  ;;  %s1320_s11 = sshll.u32 %s381_s13, 4  ;;  %s1307_s29 = scalar_lea.sflag [#allocation4], %s2312_s3  ;;  %s2425_s11 = int_to_ptr.vmem [resolvable:$true] %s1320_s11 }
  0xd3   : > { %1554 = vmatprep.subr.mxu1 %v2005_v1  ;;  %s1915_s16 = scalar_lea.vmem %s2425_s11, 128  ;;  %p2529_p0 = scmp.ne.s32.totalorder %s2511_s15, 0 }
  0xd4   : > { %1541 = vmatmul.mubr.msk.f32.vlgmr.msra.gmra.mrb[0].mxu0 %vm387_vm1, %v382_v14  ;;  %p1916_p10 = scmp.ne.s32.totalorder %s2425_s11, %s1915_s16  ;;  %s2016_s25 = smov [#allocation13]  }
  0xd5   : > { %1552 = vmatmul.mubr.msk.f32.vlgmr.msra.gmra.mrb[0].mxu1 %vm387_vm1, %v382_v14  ;;  %1566 = vmatprep.mubr.msk.f32.mxu0 %vm2004_vm0, %v2005_v1  ;;  %s1919_s18 = sshll.u32 %s2016_s25, 4  ;;  %s1920_s18 = int_to_ptr.vmem [resolvable:$false] %s1919_s18 }
  0xd6   : > { %1556 = vmatprep.mubr.msk.f32.mxu1 %vm2004_vm0, %v2005_v1  ;;  %p1917_p4 = pnand %p1916_p10, %p2529_p0  ;;  %s1921_s7 = scalar_lea.vmem %s1920_s18, 256 }
  0xd7   : > { %p1922_p13 = scmp.lt.s32.totalorder %s2425_s11, %s1920_s18  ;;  %p1923_p7 = scmp.lt.s32.totalorder %s1921_s7, %s1915_s16 }
  0xd8   : > { %p1918_p9 = pneg %p1917_p4 }
  0xd9   : > { %p1924_p3 = por %p1923_p7, %p1922_p13 }
  0xdb   : > { %p1925_p5 = pnand %p1924_p3, %p1918_p9 }
 0x1a7   : > { %v457_v17 = vpop.f32.mrb[0].mxu0 }
 0x1a8   : > { %v536_v18 = vmul.f32 %v535_v15, %v457_v17  ;;  %v531_v19 = vpop.f32.mrb[0].mxu1  ;;  %v1542_v20 = vpop.f32.mrb[1].mxu0 }
 0x1a9   : > { %v538_v21 = vmul.f32 %v537_v16, %v531_v19  ;;  %v1553_v22 = vpop.f32.mrb[1].mxu1 }
 0x1ab   : > { %v2360_v23 = vadd.f32 %v538_v21, %v536_v18 }
 0x1ad   : > { %880 = vrot.lane.b32.xlu1 %v2360_v23, %s2006_s27  ;;  %546 = vrot.lane.b32.xlu0 %v2360_v23, %s2007_s20 }
 0x1b1   : > { %878 = vrot.lane.b32.xlu1 %v2360_v23, %s2008_s10  ;;  %715 = vrot.lane.b32.xlu0 %v2360_v23, %s2009_s26 }
 0x1b5   : > { %1048 = vrot.lane.b32.xlu0 %v2360_v23, %s2010_s24 }
 0x21f   : > { %v547_v24 = vpop.permute.xlu0 %546  ;;  %v881_v25 = vpop.permute.xlu1 %880 }
 0x220   : > { %1555 = vmatpush3.xpose.msk.msra.mxu1 %vm548_vm2, %v547_v24  ;;  %1565 = vmatpush3.xpose.msk.msra.mxu0 %vm548_vm2, %v547_v24 }
 0x221   : > { %1574 = vmatprep.subr.mxu0 %v2005_v1  ;;  %1559 = vmatprep.subr.mxu1 %v2005_v1 }
 0x223   : > { %1557 = vmatmul.mubr.msk.f32.vlgmr.msra.gmra.mrb[2].mxu1 %vm548_vm2, %v2360_v23  ;;  %v716_v26 = vpop.permute.xlu0 %715  ;;  %v879_v27 = vpop.permute.xlu1 %878 }
 0x224   : > { %1567 = vmatmul.mubr.msk.f32.vlgmr.msra.gmra.mrb[2].mxu0 %vm548_vm2, %v716_v26  ;;  %1561 = vmatprep.mubr.msk.f32.mxu1 %vm2004_vm0, %v2005_v1 }
 0x225   : > { %1575 = vmatpush3.xpose.msk.msra.mxu0 %vm548_vm2, %v881_v25  ;;  %1576 = vmatprep.mubr.msk.f32.mxu0 %vm2004_vm0, %v2005_v1 }
 0x226   : > { %1584 = vmatprep.subr.mxu0 %v2005_v1 }
 0x227   : > { %v1049_v28 = vpop.permute.xlu0 %1048 }
 0x228   : > { %1577 = vmatmul.mubr.msk.f32.vlgmr.msra.gmra.mrb[4].mxu0 %vm548_vm2, %v879_v27 }
 0x229   : > { %1585 = vmatpush3.xpose.msk.msra.mxu0 %vm548_vm2, %v881_v25  ;;  %1586 = vmatprep.mubr.msk.f32.mxu0 %vm2004_vm0, %v2005_v1 }
 0x22a   : > { %1617 = vmatprep.subr.bf16.mxu0 %v2003_v0 }
 0x22c   : > { %1587 = vmatmul.mubr.msk.f32.vlgmr.msra.gmra.mrb[6].mxu0 %vm548_vm2, %v1049_v28 }
 0x22d   : > { %1602 = vmatprep.mubr.msk.f32.mxu0 %vm2004_vm0, %v2005_v1 }
 0x2f6   : > { %v619_v32 = vpop.f32.mrb[2].mxu1 }
 0x2f7   : > { %v623_v33 = vmul.f32 0.35355338, %v619_v32  ;;  %v1558_v34 = vpop.f32.mrb[3].mxu1  ;;  %v785_v35 = vpop.f32.mrb[2].mxu0 }
 0x2f8   : > { %v789_v36 = vmul.f32 0.35355338, %v785_v35  ;;  %v1568_v37 = vpop.f32.mrb[3].mxu0 }
 0x2f9   : > { %v624_v38 = vsel %vm544_vm3, %v623_v33, -inf  ;;  %v1229_v37 = vld [vmem:[#allocation11 + $0x8] sm:$0xff] }
 0x2fa   : > { %v625_v39 = vsel %vm548_vm2, %v624_v38, -inf  ;;  %v790_v40 = vsel %vm544_vm3, %v789_v36, -inf  ;;  %v1228_v36 = vld [vmem:[#allocation11] sm:$0xff] }
 0x2fb   : > { %626 = vmax.xlane.f32.xlu1 %v625_v39  ;;  %v952_v41 = vpop.f32.mrb[4].mxu0  ;;  %v791_v42 = vsel %vm548_vm2, %v790_v40, -inf  ;;  %v1230_v39 = vld [vmem:[#allocation11 + $0x10] sm:$0xff] }
 0x2fc   : > { %v956_v43 = vmul.f32 0.35355338, %v952_v41  ;;  %792 = vmax.xlane.f32.xlu0 %v791_v42  ;;  %v1578_v44 = vpop.f32.mrb[5].mxu0 }
 0x2fe   : > { %v957_v45 = vsel %vm544_vm3, %v956_v43, -inf }
 0x2ff   : > { %v1118_v46 = vpop.f32.mrb[6].mxu0  ;;  %v958_v47 = vsel %vm548_vm2, %v957_v45, -inf }
 0x300   : > { %v1122_v48 = vmul.f32 0.35355338, %v1118_v46  ;;  %959 = vmax.xlane.f32.xlu0 %v958_v47  ;;  %v1588_v49 = vpop.f32.mrb[7].mxu0 }
 0x302   : > { %v1123_v50 = vsel %vm544_vm3, %v1122_v48, -inf }
 0x303   : > { %v1124_v51 = vsel %vm548_vm2, %v1123_v50, -inf }
 0x304   : > { %1125 = vmax.xlane.f32.xlu1 %v1124_v51 }
 0x388   : > { %v627_v52 = vpop.xlane.xlu1 %626 }
 0x389   : > { %v628_v53 = vsub.f32 %v624_v38, %v627_v52  ;;  %v793_v54 = vpop.xlane.xlu0 %792  ;;  %v1618_v38 = vpack.c.bf16 %v1229_v37, %v1228_v36 }
 0x38a   : > { %v794_v55 = vsub.f32 %v790_v40, %v793_v54  ;;  %v1231_v40 = vld [vmem:[#allocation11 + $0x18] sm:$0xff] }
 0x38b   : > { %v629_v56 = vmul.f32 1.442695, %v628_v53  ;;  %1619 = vmatpush3.bf16.msra.mxu0 %v1618_v38  ;;  %v1621_v41 = vpack.c.bf16 %v1231_v40, %v1230_v39 }
 0x38c   : > { %v795_v57 = vmul.f32 1.442695, %v794_v55  ;;  %1620 = vmatprep.subr.bf16.mxu0 %v2003_v0 }
 0x38d   : > { %1725 = vpow2.f32 %v629_v56  ;;  %v960_v58 = vpop.xlane.xlu0 %959 }
 0x38e   : > { %1727 = vpow2.f32 %v795_v57  ;;  %v961_v59 = vsub.f32 %v957_v45, %v960_v58 }
 0x38f   : > { %1622 = vmatpush3.bf16.msra.mxu0 %v1621_v41 }
 0x390   : > { %v962_v60 = vmul.f32 1.442695, %v961_v59 }
 0x391   : > { %v1126_v61 = vpop.xlane.xlu1 %1125 }
 0x392   : > { %1729 = vpow2.f32 %v962_v60  ;;  %v1127_v62 = vsub.f32 %v1123_v50, %v1126_v61 }
 0x394   : > { %v1128_v63 = vmul.f32 1.442695, %v1127_v62 }
 0x396   : > { %1731 = vpow2.f32 %v1128_v63 }
 0x397   : > { %v1726_v2 = vpop.eup %1725 }
 0x398   : > { %v1728_v3 = vpop.eup %1727  ;;  %v631_v4 = vsel %vm548_vm2, %v1726_v2, 0.0 }
 0x399   : > { %632 = vadd.xlane.f32.xlu0 %v631_v4  ;;  %v797_v5 = vsel %vm548_vm2, %v1728_v3, 0.0 }
 0x39a   : > { %798 = vadd.xlane.f32.xlu1 %v797_v5 }
 0x39c   : > { %v1730_v6 = vpop.eup %1729 }
 0x39d   : > { %v964_v7 = vsel %vm548_vm2, %v1730_v6, 0.0 }
 0x39e   : > { %965 = vadd.xlane.f32.xlu0 %v964_v7 }
 0x3a0   : > { %v1732_v8 = vpop.eup %1731 }
 0x3a1   : > { %v1130_v9 = vsel %vm548_vm2, %v1732_v8, 0.0 }
 0x3a2   : > { %1131 = vadd.xlane.f32.xlu1 %v1130_v9 }
 0x3b3   : > { %972 = vrot.lane.b32.xlu1 %v2360_v23, %s2011_s12 }
 0x3b4   : > { %639 = vrot.lane.b32.xlu0 %v2360_v23, %s2012_s21 }
 0x426   : > { %v633_v10 = vpop.xlane.xlu0 %632 }
 0x427   : > { %1733 = vrcp.f32 %v633_v10  ;;  %v799_v11 = vpop.xlane.xlu1 %798 }
 0x428   : > { %1735 = vrcp.f32 %v799_v11 }
 0x42b   : > { %v966_v12 = vpop.xlane.xlu0 %965 }
 0x42c   : > { %1737 = vrcp.f32 %v966_v12 }
 0x42f   : > { %v640_v13 = vpop.permute.xlu0 %639  ;;  %v1132_v14 = vpop.xlane.xlu1 %1131 }
 0x430   : > { %1739 = vrcp.f32 %v1132_v14  ;;  %1560 = vmatpush3.msra.mxu1 %v640_v13 }
 0x431   : > { %v1734_v15 = vpop.eup %1733  ;;  %1569 = vmatprep.subr.mxu1 %v2005_v1 }
 0x432   : > { %v1736_v16 = vpop.eup %1735  ;;  %v635_v17 = vmul.f32 %v1734_v15, %v633_v10 }
 0x433   : > { %v801_v18 = vmul.f32 %v1736_v16, %v799_v11  ;;  %v973_v32 = vpop.permute.xlu1 %972 }
 0x434   : > { %v636_v19 = vsub.f32 2.0, %v635_v17 }
 0x435   : > { %v802_v20 = vsub.f32 2.0, %v801_v18 }
 0x436   : > { %v1738_v21 = vpop.eup %1737  ;;  %v637_v22 = vmul.f32 %v1734_v15, %v636_v19 }
 0x437   : > { %v968_v23 = vmul.f32 %v1738_v21, %v966_v12  ;;  %v803_v25 = vmul.f32 %v1736_v16, %v802_v20 }
 0x438   : > { %v638_v24 = vmul.f32 %v1726_v2, %v637_v22 }
 0x439   : > { %v969_v26 = vsub.f32 2.0, %v968_v23  ;;  %v804_v29 = vmul.f32 %v1728_v3, %v803_v25 }
 0x43a   : > { %v1740_v27 = vpop.eup %1739  ;;  %1562 = vmatmul.mubr.msk.f32.vlgmr.msra.gmra.mrb[4].mxu1 %vm548_vm2, %v638_v24 }
 0x43b   : > { %v1134_v28 = vmul.f32 %v1740_v27, %v1132_v14  ;;  %1570 = vmatpush3.msra.mxu1 %v640_v13  ;;  %1571 = vmatprep.mubr.msk.f32.mxu1 %vm2004_vm0, %v2005_v1  ;;  %v970_v30 = vmul.f32 %v1738_v21, %v969_v26 }
 0x43c   : > { %1579 = vmatprep.subr.mxu1 %v2005_v1 }
 0x43d   : > { %v1135_v31 = vsub.f32 2.0, %v1134_v28  ;;  %v971_v33 = vmul.f32 %v1730_v6, %v970_v30 }
 0x43e   : > { %1572 = vmatmul.mubr.msk.f32.vlgmr.msra.gmra.mrb[6].mxu1 %vm548_vm2, %v804_v29 }
 0x43f   : > { %1580 = vmatpush3.msra.mxu1 %v973_v32  ;;  %1581 = vmatprep.mubr.msk.f32.mxu1 %vm2004_vm0, %v2005_v1  ;;  %v1136_v34 = vmul.f32 %v1740_v27, %v1135_v31 }
 0x440   : > { %1589 = vmatprep.subr.mxu1 %v2005_v1 }
 0x441   : > { %v1137_v35 = vmul.f32 %v1732_v8, %v1136_v34 }
 0x442   : > { %1582 = vmatmul.mubr.msk.f32.vlgmr.msra.gmra.mrb[8].mxu1 %vm548_vm2, %v971_v33 }
 0x443   : > { %1590 = vmatpush3.msra.mxu1 %v973_v32  ;;  %1591 = vmatprep.mubr.msk.f32.mxu1 %vm2004_vm0, %v2005_v1 }
 0x446   : > { %1592 = vmatmul.mubr.msk.f32.vlgmr.msra.gmra.mrb[10].mxu1 %vm548_vm2, %v1137_v35 }
 0x50d   : > { %v711_v42 = vpop.f32.mrb[4].mxu1 }
 0x50e   : > { %v1563_v43 = vpop.f32.mrb[5].mxu1 }
 0x511   : > { %v874_v44 = vpop.f32.mrb[6].mxu1 }
 0x512   : > { %1212 = vrot.lane.b32.xlu1 %v874_v44, %s2013_s14  ;;  %v1573_v45 = vpop.f32.mrb[7].mxu1 }
 0x515   : > { %v1044_v1 = vpop.f32.mrb[8].mxu1 }
 0x516   : > { %1216 = vrot.lane.b32.xlu0 %v1044_v1, %s2014_s28  ;;  %v1583_v46 = vpop.f32.mrb[9].mxu1 }
 0x519   : > { %v1207_v47 = vpop.f32.mrb[10].mxu1 }
 0x51a   : > { %1220 = vrot.lane.b32.xlu1 %v1207_v47, %s2015_s17  ;;  %v1593_v0 = vpop.f32.mrb[11].mxu1 }
 0x584   : > { %v1213_v48 = vpop.permute.xlu1 %1212 }
 0x585   : > { %v1223_v50 = vsel %vm548_vm2, %v711_v42, %v1213_v48 }
 0x588   : > { %v1217_v49 = vpop.permute.xlu0 %1216 }
 0x589   : > { %v1225_v51 = vsel %vm1224_vm4, %v1223_v50, %v1217_v49 }
 0x58c   : > { %v1221_v52 = vpop.permute.xlu1 %1220 }
 0x58d   : > { %v1227_v53 = vsel %vm1226_vm5, %v1225_v51, %v1221_v52 }
 0x58e   : > { %1603 = vmatmul.mubr.msk.f32.vlgmr.msra.gmra.mrb[8].mxu0 %vm387_vm1, %v1227_v53 }
 0x661   : > { %v1301_v54 = vpop.f32.mrb[8].mxu0 }
 0x662   : > { %1305 = vst.msk [vmem:[%s381_s13] sm:$0xff] %vm387_vm1, %v1301_v54  ;;  %v1604_v55 = vpop.f32.mrb[9].mxu0 }
 0x663   : > { %1928 = shalt.err (!%p1925_p5)
}
 0x664   : > { %s1929_s3 = scalar_lea.hbm %s2423_s8, 128  ;;  %s1933_s20 = scalar_lea.hbm %s2474_s6, 256 }
 0x665   : > { %p1930_p2 = scmp.ne.s32.totalorder %s2423_s8, %s1929_s3  ;;  %p1934_p12 = scmp.lt.u32.totalorder %s2423_s8, %s2474_s6 }
 0x666   : > { %p1935_p1 = scmp.lt.u32.totalorder %s1933_s20, %s1929_s3  ;;  %p1937_p10 = scmp.lt.u32.totalorder %s1929_s3, %s2423_s8 }
 0x667   : > { %p1931_p8 = pnand %p1930_p2, %p2529_p0 }
 0x668   : > { %p1936_p6 = por %p1935_p1, %p1934_p12 }
 0x669   : > { %p1932_p11 = pneg %p1931_p8 }
 0x66a   : > { %p1938_p4 = por %p1937_p10, %p1936_p6 }
 0x66c   : > { %p1939_p9 = pnand %p1938_p4, %p1932_p11 }
 0x66e   : > { %1942 = shalt.err (!%p1939_p9)
}
 0x66f   : > { %1641 = dma.vmem_to_hbm [thread:$0]  (%p2529_p0), %s2425_s11, 128, %s2423_s8, %s1307_s29  }
 0x670 PF: > { %s2530_s24 = sld [smem:[#allocation19_spill]]  ;;  %s2531_s12 = sld [smem:[#allocation21_spill]] }
 0x671   : > { %s2532_s21 = sld [smem:[#allocation20_spill]] }
 0x676   : > { %s1332_s14 = sand.u32 1, %s2530_s24   ;;  %p2533_p13 = scmp.ne.s32.totalorder %s2531_s12, 0 }
 0x677   : > { %p2534_p7 = scmp.ge.s32.totalorder %s2532_s21, 2  ;;  %s1333_s28 = scalar_lea.sflag [#allocation4], %s1332_s14 }
 0x679   : > { %p1664_p3 = pnand %p2534_p7, %p2533_p13 }
 0x67b   : > { %1976 = dma.done.wait (!%p1664_p3), %s1333_s28, 128  }
 0x67c   : > { %1978 = vsyncadd (!%p1664_p3), %s1333_s28, 4294967168  ;;  %s2535_s24 = sld [smem:[#allocation22_spill]]  ;;  %s2536_s17 = sld [smem:[#allocation23_spill]] }
 0x67d   : > { %s2537_s21 = smov %s1985_s22  ;;  %s2538_s22 = smov %s1989_s23 }
 0x682   : > { %p24_p5 = scmp.ge.s32.totalorder %s2535_s24, 4   ;;  %s2539_s23 = smov %s2536_s17 }
 0x684   :  { %26 = sbr.rel (!%p24_p5) target bundleno = 12 (0xc), region = 125 }
 0x68b   :  { %1338 = vsyncpa [#allocation3], 1 }
 0x68c   :  { %1340 = vsyncpa [#allocation3 + $0x1], 1 }
 0x68d   :  { %1341 = vsyncpa [#allocation6], 1 }
 0x68e   :  { %1343 = vsyncpa [#allocation6 + $0x1], 1 }
 0x68f   :  { %1344 = vsyncpa [#allocation9], 1 }
 0x690   :  { %1345 = vsyncpa [#allocation12], 1 }
 0x691   :  { %1346 = vsyncpa [#allocation4], 1 }
 0x692   :  { %1348 = vsyncpa [#allocation4 + $0x1], 1 }

</bundles_post_ra>
